<compile_context>
chip_gen: v5e
topology: v5e:2x2
jax: 0.10.0
libtpu: 0.0.40
codegen_flags: <defaults>
</compile_context>

<pallas_src>
import jax
import jax.numpy as jnp
from jax import lax
from jax.experimental import pallas as pl
from jax.experimental.pallas import tpu as pltpu


# ----------------------------- Pallas kernel ------------------------------ #
def _seq_attn_action_kernel(act_ref, x_ref, y_ref, mask_ref,
                            w1t_ref, w2t_ref, bias_ref, v_ref, out_ref):
    """block_b batch rows per grid step against VMEM-resident parameter tables.

    Block shapes per step:
      act_ref  : (Bp,)  int32 in SMEM (scalar prefetch; whole padded batch)
      x_ref    : (Tb, L, Dx)
      y_ref    : (Tb, 1, Dy)
      mask_ref : (Tb, 1, L)    int32, nonzero = masked position
      w1t_ref  : (A, Dh, Dx)   resident (constant index_map)
      w2t_ref  : (A, Dh, Dy)   resident
      bias_ref : (A, Dh, 1)    resident (b1 + b2, column-oriented)
      v_ref    : (A, 1, Dh)    resident
      out_ref  : (Tb, 1, L)    scores (L lane-dense)
    """
    tb = x_ref.shape[0]
    base = pl.program_id(0) * tb
    neg_inf = jnp.float32(-jnp.inf)

    def row(r, carry):
        a = act_ref[base + r]                      # action for this batch row (SMEM)

        # xt = W1[a]^T x_r^T  -> (Dh, L); trans_b contraction (contract last dims).
        xt = lax.dot_general(w1t_ref[a], x_ref[r], (((1,), (1,)), ((), ())),
                             preferred_element_type=jnp.float32)
        # yt = W2[a]^T y_r    -> (Dh, 1)
        yt = lax.dot_general(w2t_ref[a], y_ref[r], (((1,), (1,)), ((), ())),
                             preferred_element_type=jnp.float32)

        t = jnp.tanh(xt + yt + bias_ref[a])        # (Dh, L), full-lane vregs

        # s = v[a] . t        -> lane-dense (1, L) row via MXU.
        s = lax.dot_general(v_ref[a], t, (((1,), (0,)), ((), ())),
                            preferred_element_type=jnp.float32)

        out_ref[r] = jnp.where(mask_ref[r] != 0, neg_inf, s)
        return carry

    lax.fori_loop(0, tb, row, 0, unroll=True)


# ------------------------------ JAX wrapper -------------------------------- #
def seq_attention_action(x, y, x_mask, actions, params, *, block_b=None,
                         use_bf16_mxu=False):
    """x: (B, L, Dx), y: (B, Dy), x_mask: (B, L) bool, actions: (B,) int.

    params = (w1, b1, w2, b2, v) with shapes
      w1: (A, Dx, Dh), b1: (A, Dh), w2: (A, Dy, Dh), b2: (A, Dh), v: (A, Dh)
    Returns scores (B, L) with masked positions set to -inf.
    """
    w1, b1, w2, b2, v = params
    B, L, Dx = x.shape
    Dy = y.shape[-1]
    A, _, Dh = w1.shape

    # Rows per grid step: amortize per-step overhead, but keep >= 2 grid steps
    # when possible so both v7x TensorCores have work under "parallel".
    if block_b is None:
        block_b = max(1, min(8, pl.cdiv(B, 2)))
    n_steps = pl.cdiv(B, block_b)
    Bp = n_steps * block_b

    actions = actions.astype(jnp.int32)
    mask_i = x_mask.astype(jnp.int32).reshape(B, 1, L)
    y_r = y.reshape(B, 1, Dy)
    if Bp != B:
        pad = Bp - B
        x = jnp.pad(x, ((0, pad), (0, 0), (0, 0)))
        y_r = jnp.pad(y_r, ((0, pad), (0, 0), (0, 0)))
        mask_i = jnp.pad(mask_i, ((0, pad), (0, 0), (0, 0)), constant_values=1)
        actions = jnp.pad(actions, (0, pad))

    # Resident parameter tables, laid out for trans_b matmuls and (Dh, *) adds.
    w1t = jnp.transpose(w1, (0, 2, 1))             # (A, Dh, Dx)
    w2t = jnp.transpose(w2, (0, 2, 1))             # (A, Dh, Dy)
    bias = (b1 + b2).reshape(A, Dh, 1)             # folded bias, column form
    v_r = v.reshape(A, 1, Dh)

    x_in, y_in = x, y_r
    if use_bf16_mxu:
        # bf16 MXU operands (accumulation stays f32 via preferred_element_type).
        x_in = x.astype(jnp.bfloat16)
        y_in = y_r.astype(jnp.bfloat16)
        w1t = w1t.astype(jnp.bfloat16)
        w2t = w2t.astype(jnp.bfloat16)

    out = pl.pallas_call(
        _seq_attn_action_kernel,
        out_shape=jax.ShapeDtypeStruct((Bp, 1, L), jnp.float32),
        grid_spec=pltpu.PrefetchScalarGridSpec(
            num_scalar_prefetch=1,                 # actions -> SMEM
            grid=(n_steps,),
            in_specs=[
                pl.BlockSpec((block_b, L, Dx), lambda i, act: (i, 0, 0)),  # x
                pl.BlockSpec((block_b, 1, Dy), lambda i, act: (i, 0, 0)),  # y
                pl.BlockSpec((block_b, 1, L), lambda i, act: (i, 0, 0)),   # mask
                pl.BlockSpec((A, Dh, Dx), lambda i, act: (0, 0, 0)),       # W1^T (resident)
                pl.BlockSpec((A, Dh, Dy), lambda i, act: (0, 0, 0)),       # W2^T (resident)
                pl.BlockSpec((A, Dh, 1), lambda i, act: (0, 0, 0)),        # b1+b2 (resident)
                pl.BlockSpec((A, 1, Dh), lambda i, act: (0, 0, 0)),        # v (resident)
            ],
            out_specs=pl.BlockSpec((block_b, 1, L), lambda i, act: (i, 0, 0)),
        ),
        compiler_params=pltpu.CompilerParams(
            dimension_semantics=("parallel",)),    # batch blocks are independent
    )(actions, x_in, y_in, mask_i, w1t, w2t, bias, v_r)

    return out.reshape(Bp, L)[:B]


# ------------------------------ init & reference --------------------------- #
def init_params(key, x_size, y_size, n_actions):
    """Matches reset_parameters(): U(-stdv, stdv) with stdv=1/sqrt(x_size//4); biases 0."""
    d = x_size // 4
    stdv = 1.0 / jnp.sqrt(jnp.float32(d))
    k1, k2, k3 = jax.random.split(key, 3)
    w1 = jax.random.uniform(k1, (n_actions, x_size, d), jnp.float32, -stdv, stdv)
    b1 = jnp.zeros((n_actions, d), jnp.float32)
    w2 = jax.random.uniform(k2, (n_actions, y_size, d), jnp.float32, -stdv, stdv)
    b2 = jnp.zeros((n_actions, d), jnp.float32)
    v = jax.random.uniform(k3, (n_actions, d), jnp.float32, -stdv, stdv)
    return (w1, b1, w2, b2, v)


def seq_attention_action_reference(x, y, x_mask, actions, params):
    """Pure-JAX reference mirroring the PyTorch forward."""
    w1, b1, w2, b2, v = params
    w1a, b1a = w1[actions], b1[actions]
    w2a, b2a = w2[actions], b2[actions]
    va = v[actions]
    xt = jnp.einsum('bld,bdh->blh', x, w1a) + b1a[:, None, :]
    yt = jnp.einsum('bd,bdh->bh', y, w2a) + b2a
    t = jnp.tanh(xt + yt[:, None, :])
    s = jnp.einsum('blh,bh->bl', t, va)
    return jnp.where(x_mask, -jnp.inf, s)


# ----------------------------------- main ----------------------------------- #
if __name__ == "__main__":
    BATCH, SEQ = 4, 128
    X_SIZE, Y_SIZE, N_ACTIONS = 128, 64, 8   # Dh = X_SIZE // 4 = 32

    key = jax.random.PRNGKey(0)
    kx, ky, ka, kp = jax.random.split(key, 4)

    x = jax.random.normal(kx, (BATCH, SEQ, X_SIZE), jnp.float32)
    y = jax.random.normal(ky, (BATCH, Y_SIZE), jnp.float32)
    actions = jax.random.randint(ka, (BATCH,), 0, N_ACTIONS, jnp.int32)
    lengths = jnp.array([SEQ, 100, 64, 17], jnp.int32)            # per-row valid lengths
    x_mask = jnp.arange(SEQ)[None, :] >= lengths[:, None]         # True = masked
    params = init_params(kp, X_SIZE, Y_SIZE, N_ACTIONS)

    out = jax.jit(seq_attention_action)(x, y, x_mask, actions, params)
    out = jax.block_until_ready(out)

    ref = seq_attention_action_reference(x, y, x_mask, actions, params)

    assert out.shape == (BATCH, SEQ), out.shape
    # compare finite (unmasked) entries numerically, masked entries must be -inf
    finite_close = jnp.allclose(jnp.where(x_mask, 0.0, out),
                                jnp.where(x_mask, 0.0, ref),
                                atol=1e-4, rtol=1e-4)
    inf_ok = jnp.all(jnp.where(x_mask, out == -jnp.inf, True))
    assert bool(finite_close), float(
        jnp.max(jnp.abs(jnp.where(x_mask, 0.0, out) - jnp.where(x_mask, 0.0, ref))))
    assert bool(inf_ok)

    print("KERNEL_OK")
</pallas_src>

<mosaic_0001>
module attributes {stable_mosaic.version = 11 : i64} {
  func.func @_seq_attn_action_kernel(%arg0: i32, %arg1: memref<4xi32, #tpu.memory_space<smem>>, %arg2: memref<2x128x128xf32, #tpu.memory_space<vmem>>, %arg3: memref<2x1x64xf32, #tpu.memory_space<vmem>>, %arg4: memref<2x1x128xi32, #tpu.memory_space<vmem>>, %arg5: memref<8x32x128xf32, #tpu.memory_space<vmem>>, %arg6: memref<8x32x64xf32, #tpu.memory_space<vmem>>, %arg7: memref<8x32x1xf32, #tpu.memory_space<vmem>>, %arg8: memref<8x1x32xf32, #tpu.memory_space<vmem>>, %arg9: memref<2x1x128xf32, #tpu.memory_space<vmem>>) attributes {dimension_semantics = [#tpu.dimension_semantics<parallel>], iteration_bounds = array<i64: 2>, scalar_prefetch = 1 : i64, scratch_operands = 0 : i64, tpu.core_type = #tpu.core_type<tc>, window_params = [{transform_indices = @transform_0, window_bounds = array<i64: 2, 128, 128>}, {transform_indices = @transform_1, window_bounds = array<i64: 2, 1, 64>}, {transform_indices = @transform_2, window_bounds = array<i64: 2, 1, 128>}, {pipeline_mode = #tpu.pipeline_mode<synchronous>, transform_indices = @transform_3, window_bounds = array<i64: 8, 32, 128>}, {pipeline_mode = #tpu.pipeline_mode<synchronous>, transform_indices = @transform_4, window_bounds = array<i64: 8, 32, 64>}, {pipeline_mode = #tpu.pipeline_mode<synchronous>, transform_indices = @transform_5, window_bounds = array<i64: 8, 32, 1>}, {pipeline_mode = #tpu.pipeline_mode<synchronous>, transform_indices = @transform_6, window_bounds = array<i64: 8, 1, 32>}, {transform_indices = @transform_7, window_bounds = array<i64: 2, 1, 128>}]} {
    %c2_i32 = arith.constant 2 : i32
    %0 = arith.muli %arg0, %c2_i32 : i32
    %cst = arith.constant 0xFF800000 : f32
    %c0_i32 = arith.constant 0 : i32
    %1 = arith.addi %0, %c0_i32 : i32
    %2 = arith.index_cast %1 : i32 to index
    %3 = memref.load %arg1[%2] : memref<4xi32, #tpu.memory_space<smem>>
    %4 = arith.index_cast %3 : i32 to index
    %c0 = arith.constant 0 : index
    %c0_0 = arith.constant 0 : index
    %5 = vector.load %arg5[%4, %c0, %c0_0] : memref<8x32x128xf32, #tpu.memory_space<vmem>>, vector<1x32x128xf32>
    %6 = vector.shape_cast %5 : vector<1x32x128xf32> to vector<32x128xf32>
    %7 = arith.index_cast %c0_i32 : i32 to index
    %c0_1 = arith.constant 0 : index
    %c0_2 = arith.constant 0 : index
    %8 = vector.load %arg2[%7, %c0_1, %c0_2] : memref<2x128x128xf32, #tpu.memory_space<vmem>>, vector<1x128x128xf32>
    %9 = vector.shape_cast %8 : vector<1x128x128xf32> to vector<128x128xf32>
    %cst_3 = arith.constant dense<0.000000e+00> : vector<32x128xf32>
    %10 = tpu.matmul %6, %9, %cst_3 {dimension_numbers = #tpu.dot_dimension_numbers<[1], [1], [0], [0], [0, 0, 1, 0], [], []>} : vector<32x128xf32>, vector<128x128xf32>, vector<32x128xf32> -> vector<32x128xf32>
    %11 = arith.index_cast %3 : i32 to index
    %c0_4 = arith.constant 0 : index
    %c0_5 = arith.constant 0 : index
    %12 = vector.load %arg6[%11, %c0_4, %c0_5] : memref<8x32x64xf32, #tpu.memory_space<vmem>>, vector<1x32x64xf32>
    %13 = vector.shape_cast %12 : vector<1x32x64xf32> to vector<32x64xf32>
    %14 = arith.index_cast %c0_i32 : i32 to index
    %c0_6 = arith.constant 0 : index
    %c0_7 = arith.constant 0 : index
    %15 = vector.load %arg3[%14, %c0_6, %c0_7] : memref<2x1x64xf32, #tpu.memory_space<vmem>>, vector<1x1x64xf32>
    %16 = vector.shape_cast %15 : vector<1x1x64xf32> to vector<1x64xf32>
    %cst_8 = arith.constant dense<0.000000e+00> : vector<32x1xf32>
    %17 = tpu.matmul %13, %16, %cst_8 {dimension_numbers = #tpu.dot_dimension_numbers<[1], [1], [0], [0], [0, 0, 1, 0], [], []>} : vector<32x64xf32>, vector<1x64xf32>, vector<32x1xf32> -> vector<32x1xf32>
    %18 = vector.broadcast %17 : vector<32x1xf32> to vector<32x128xf32>
    %19 = arith.addf %10, %18 : vector<32x128xf32>
    %20 = arith.index_cast %3 : i32 to index
    %c0_9 = arith.constant 0 : index
    %c0_10 = arith.constant 0 : index
    %21 = vector.load %arg7[%20, %c0_9, %c0_10] : memref<8x32x1xf32, #tpu.memory_space<vmem>>, vector<1x32x1xf32>
    %22 = vector.shape_cast %21 : vector<1x32x1xf32> to vector<32x1xf32>
    %23 = vector.broadcast %22 : vector<32x1xf32> to vector<32x128xf32>
    %24 = arith.addf %19, %23 : vector<32x128xf32>
    %25 = math.tanh %24 : vector<32x128xf32>
    %26 = arith.index_cast %3 : i32 to index
    %c0_11 = arith.constant 0 : index
    %c0_12 = arith.constant 0 : index
    %27 = vector.load %arg8[%26, %c0_11, %c0_12] : memref<8x1x32xf32, #tpu.memory_space<vmem>>, vector<1x1x32xf32>
    %28 = vector.shape_cast %27 : vector<1x1x32xf32> to vector<1x32xf32>
    %cst_13 = arith.constant dense<0.000000e+00> : vector<1x128xf32>
    %29 = tpu.matmul %28, %25, %cst_13 {dimension_numbers = #tpu.dot_dimension_numbers<[1], [0], [0], [1], [0, 0, 1, 1], [], []>} : vector<1x32xf32>, vector<32x128xf32>, vector<1x128xf32> -> vector<1x128xf32>
    %30 = arith.index_cast %c0_i32 : i32 to index
    %c0_14 = arith.constant 0 : index
    %c0_15 = arith.constant 0 : index
    %31 = vector.load %arg4[%30, %c0_14, %c0_15] : memref<2x1x128xi32, #tpu.memory_space<vmem>>, vector<1x1x128xi32>
    %32 = vector.shape_cast %31 : vector<1x1x128xi32> to vector<1x128xi32>
    %c0_i32_16 = arith.constant 0 : i32
    %33 = vector.broadcast %c0_i32_16 : i32 to vector<1x128xi32>
    %34 = arith.cmpi ne, %32, %33 : vector<1x128xi32>
    %35 = vector.broadcast %cst : f32 to vector<1x128xf32>
    %36 = arith.select %34, %35, %29 : vector<1x128xi1>, vector<1x128xf32>
    %37 = arith.index_cast %c0_i32 : i32 to index
    %c0_17 = arith.constant 0 : index
    %c0_18 = arith.constant 0 : index
    %38 = vector.load %arg9[%37, %c0_17, %c0_18] : memref<2x1x128xf32, #tpu.memory_space<vmem>>, vector<1x1x128xf32>
    %39 = vector.shape_cast %38 : vector<1x1x128xf32> to vector<1x128xf32>
    %40 = vector.shape_cast %36 : vector<1x128xf32> to vector<1x1x128xf32>
    tpu.vector_store %arg9[%37, %c0_17, %c0_18], %40 {strides = array<i32>} : memref<2x1x128xf32, #tpu.memory_space<vmem>>, vector<1x1x128xf32>,
    %c1_i32 = arith.constant 1 : i32
    %41 = arith.addi %0, %c1_i32 : i32
    %42 = arith.index_cast %41 : i32 to index
    %43 = memref.load %arg1[%42] : memref<4xi32, #tpu.memory_space<smem>>
    %44 = arith.index_cast %43 : i32 to index
    %c0_19 = arith.constant 0 : index
    %c0_20 = arith.constant 0 : index
    %45 = vector.load %arg5[%44, %c0_19, %c0_20] : memref<8x32x128xf32, #tpu.memory_space<vmem>>, vector<1x32x128xf32>
    %46 = vector.shape_cast %45 : vector<1x32x128xf32> to vector<32x128xf32>
    %47 = arith.index_cast %c1_i32 : i32 to index
    %c0_21 = arith.constant 0 : index
    %c0_22 = arith.constant 0 : index
    %48 = vector.load %arg2[%47, %c0_21, %c0_22] : memref<2x128x128xf32, #tpu.memory_space<vmem>>, vector<1x128x128xf32>
    %49 = vector.shape_cast %48 : vector<1x128x128xf32> to vector<128x128xf32>
    %cst_23 = arith.constant dense<0.000000e+00> : vector<32x128xf32>
    %50 = tpu.matmul %46, %49, %cst_23 {dimension_numbers = #tpu.dot_dimension_numbers<[1], [1], [0], [0], [0, 0, 1, 0], [], []>} : vector<32x128xf32>, vector<128x128xf32>, vector<32x128xf32> -> vector<32x128xf32>
    %51 = arith.index_cast %43 : i32 to index
    %c0_24 = arith.constant 0 : index
    %c0_25 = arith.constant 0 : index
    %52 = vector.load %arg6[%51, %c0_24, %c0_25] : memref<8x32x64xf32, #tpu.memory_space<vmem>>, vector<1x32x64xf32>
    %53 = vector.shape_cast %52 : vector<1x32x64xf32> to vector<32x64xf32>
    %54 = arith.index_cast %c1_i32 : i32 to index
    %c0_26 = arith.constant 0 : index
    %c0_27 = arith.constant 0 : index
    %55 = vector.load %arg3[%54, %c0_26, %c0_27] : memref<2x1x64xf32, #tpu.memory_space<vmem>>, vector<1x1x64xf32>
    %56 = vector.shape_cast %55 : vector<1x1x64xf32> to vector<1x64xf32>
    %cst_28 = arith.constant dense<0.000000e+00> : vector<32x1xf32>
    %57 = tpu.matmul %53, %56, %cst_28 {dimension_numbers = #tpu.dot_dimension_numbers<[1], [1], [0], [0], [0, 0, 1, 0], [], []>} : vector<32x64xf32>, vector<1x64xf32>, vector<32x1xf32> -> vector<32x1xf32>
    %58 = vector.broadcast %57 : vector<32x1xf32> to vector<32x128xf32>
    %59 = arith.addf %50, %58 : vector<32x128xf32>
    %60 = arith.index_cast %43 : i32 to index
    %c0_29 = arith.constant 0 : index
    %c0_30 = arith.constant 0 : index
    %61 = vector.load %arg7[%60, %c0_29, %c0_30] : memref<8x32x1xf32, #tpu.memory_space<vmem>>, vector<1x32x1xf32>
    %62 = vector.shape_cast %61 : vector<1x32x1xf32> to vector<32x1xf32>
    %63 = vector.broadcast %62 : vector<32x1xf32> to vector<32x128xf32>
    %64 = arith.addf %59, %63 : vector<32x128xf32>
    %65 = math.tanh %64 : vector<32x128xf32>
    %66 = arith.index_cast %43 : i32 to index
    %c0_31 = arith.constant 0 : index
    %c0_32 = arith.constant 0 : index
    %67 = vector.load %arg8[%66, %c0_31, %c0_32] : memref<8x1x32xf32, #tpu.memory_space<vmem>>, vector<1x1x32xf32>
    %68 = vector.shape_cast %67 : vector<1x1x32xf32> to vector<1x32xf32>
    %cst_33 = arith.constant dense<0.000000e+00> : vector<1x128xf32>
    %69 = tpu.matmul %68, %65, %cst_33 {dimension_numbers = #tpu.dot_dimension_numbers<[1], [0], [0], [1], [0, 0, 1, 1], [], []>} : vector<1x32xf32>, vector<32x128xf32>, vector<1x128xf32> -> vector<1x128xf32>
    %70 = arith.index_cast %c1_i32 : i32 to index
    %c0_34 = arith.constant 0 : index
    %c0_35 = arith.constant 0 : index
    %71 = vector.load %arg4[%70, %c0_34, %c0_35] : memref<2x1x128xi32, #tpu.memory_space<vmem>>, vector<1x1x128xi32>
    %72 = vector.shape_cast %71 : vector<1x1x128xi32> to vector<1x128xi32>
    %c0_i32_36 = arith.constant 0 : i32
    %73 = vector.broadcast %c0_i32_36 : i32 to vector<1x128xi32>
    %74 = arith.cmpi ne, %72, %73 : vector<1x128xi32>
    %75 = vector.broadcast %cst : f32 to vector<1x128xf32>
    %76 = arith.select %74, %75, %69 : vector<1x128xi1>, vector<1x128xf32>
    %77 = arith.index_cast %c1_i32 : i32 to index
    %c0_37 = arith.constant 0 : index
    %c0_38 = arith.constant 0 : index
    %78 = vector.load %arg9[%77, %c0_37, %c0_38] : memref<2x1x128xf32, #tpu.memory_space<vmem>>, vector<1x1x128xf32>
    %79 = vector.shape_cast %78 : vector<1x1x128xf32> to vector<1x128xf32>
    %80 = vector.shape_cast %76 : vector<1x128xf32> to vector<1x1x128xf32>
    tpu.vector_store %arg9[%77, %c0_37, %c0_38], %80 {strides = array<i32>} : memref<2x1x128xf32, #tpu.memory_space<vmem>>, vector<1x1x128xf32>,
    %c2_i32_39 = arith.constant 2 : i32
    return
  }
  func.func @transform_0(%arg0: i32, %arg1: memref<4xi32, #tpu.memory_space<smem>>) -> (i32, i32, i32) {
    %c0_i32 = arith.constant 0 : i32
    %c0_i32_0 = arith.constant 0 : i32
    %c0_i32_1 = arith.constant 0 : i32
    return %arg0, %c0_i32, %c0_i32_0 : i32, i32, i32
  }
  func.func @transform_1(%arg0: i32, %arg1: memref<4xi32, #tpu.memory_space<smem>>) -> (i32, i32, i32) {
    %c0_i32 = arith.constant 0 : i32
    %c0_i32_0 = arith.constant 0 : i32
    %c0_i32_1 = arith.constant 0 : i32
    return %arg0, %c0_i32, %c0_i32_0 : i32, i32, i32
  }
  func.func @transform_2(%arg0: i32, %arg1: memref<4xi32, #tpu.memory_space<smem>>) -> (i32, i32, i32) {
    %c0_i32 = arith.constant 0 : i32
    %c0_i32_0 = arith.constant 0 : i32
    %c0_i32_1 = arith.constant 0 : i32
    return %arg0, %c0_i32, %c0_i32_0 : i32, i32, i32
  }
  func.func @transform_3(%arg0: i32, %arg1: memref<4xi32, #tpu.memory_space<smem>>) -> (i32, i32, i32) {
    %c0_i32 = arith.constant 0 : i32
    %c0_i32_0 = arith.constant 0 : i32
    %c0_i32_1 = arith.constant 0 : i32
    %c0_i32_2 = arith.constant 0 : i32
    return %c0_i32, %c0_i32_0, %c0_i32_1 : i32, i32, i32
  }
  func.func @transform_4(%arg0: i32, %arg1: memref<4xi32, #tpu.memory_space<smem>>) -> (i32, i32, i32) {
    %c0_i32 = arith.constant 0 : i32
    %c0_i32_0 = arith.constant 0 : i32
    %c0_i32_1 = arith.constant 0 : i32
    %c0_i32_2 = arith.constant 0 : i32
    return %c0_i32, %c0_i32_0, %c0_i32_1 : i32, i32, i32
  }
  func.func @transform_5(%arg0: i32, %arg1: memref<4xi32, #tpu.memory_space<smem>>) -> (i32, i32, i32) {
    %c0_i32 = arith.constant 0 : i32
    %c0_i32_0 = arith.constant 0 : i32
    %c0_i32_1 = arith.constant 0 : i32
    %c0_i32_2 = arith.constant 0 : i32
    return %c0_i32, %c0_i32_0, %c0_i32_1 : i32, i32, i32
  }
  func.func @transform_6(%arg0: i32, %arg1: memref<4xi32, #tpu.memory_space<smem>>) -> (i32, i32, i32) {
    %c0_i32 = arith.constant 0 : i32
    %c0_i32_0 = arith.constant 0 : i32
    %c0_i32_1 = arith.constant 0 : i32
    %c0_i32_2 = arith.constant 0 : i32
    return %c0_i32, %c0_i32_0, %c0_i32_1 : i32, i32, i32
  }
  func.func @transform_7(%arg0: i32, %arg1: memref<4xi32, #tpu.memory_space<smem>>) -> (i32, i32, i32) {
    %c0_i32 = arith.constant 0 : i32
    %c0_i32_0 = arith.constant 0 : i32
    %c0_i32_1 = arith.constant 0 : i32
    return %arg0, %c0_i32, %c0_i32_0 : i32, i32, i32
  }
}

</mosaic_0001>

<bundles_post_ra>
// kernel: seq_attention_action.1
= control target key start
LH: loop header
LB: loop body
LE: loop exit
PB: predicated region body
PF: predicated region fallthrough
CT: control target
= control target key end

     0   :  { %s1056_s30 = smov [#allocation3]   ;;  %s1369_s0 = inlined_call_operand.vmem [shape: s32[4], index: 0, kind: input, shape index: {}]   ;;  %s1370_s1 = inlined_call_operand.hbm [shape: f32[4,128,128], index: 1, kind: input, shape index: {}]   ;;  %s1371_s2 = inlined_call_operand.vmem [shape: f32[4,1,64], index: 2, kind: input, shape index: {}]   ;;  %s1372_s3 = inlined_call_operand.vmem [shape: s32[4,1,128], index: 3, kind: input, shape index: {}]   ;;  %s1373_s4 = inlined_call_operand.vmem [shape: f32[8,32,128], index: 4, kind: input, shape index: {}]   ;;  %s1374_s5 = inlined_call_operand.hbm [shape: f32[8,32,64], index: 5, kind: input, shape index: {}]   ;;  %s1375_s6 = inlined_call_operand.vmem [shape: f32[8,32,1], index: 6, kind: input, shape index: {}]   ;;  %s1376_s7 = inlined_call_operand.vmem [shape: f32[8,1,32], index: 7, kind: input, shape index: {}]   ;;  %s1377_s8 = inlined_call_operand.hbm [shape: f32[4,1,128], index: 8, kind: output, shape index: {}]  }
   0x1   :  { %1380 = sst [smem:[#allocation14_spill]] %s1374_s5  ;;  %s14_s29 = sshll.u32 %s1369_s0, 4  ;;  %s15_s29 = int_to_ptr.vmem [resolvable:$true] %s14_s29 }
   0x2   :  { %17 = dma.vmem_to_smem %s15_s29, 16, %s1056_s30, [#allocation2] }
   0x3   :  { %1026 = dma.done.wait [#allocation2], 16 }
   0x4   :  { %1027 = vsyncadd [#allocation2], 4294967280 }
   0x5   :  { %20 = sfence }
   0x6   :  { %21 = vsyncpa [#allocation5], 0 }
   0x7   :  { %23 = vsyncpa [#allocation5 + $0x1], 0 }
   0x8   :  { %24 = vsyncpa [#allocation8], 0 }
   0x9   :  { %25 = vsyncpa [#allocation6], 0 }
   0xa   :  { %27 = vsyncpa [#allocation6 + $0x1], 0  ;;  %s1111_s9 = smov 0   ;;  %s1113_s10 = smov 0  }
   0xb   :  { %s1115_s11 = smov 0   ;;  %s1117_s12 = smov 0  }
   0xc LB: > { %s1132_s0 = sadd.s32 4294967295, %s1054_s12   ;;  %s782_s13 = sadd.s32 4294967294, %s1054_s12   ;;  %s1054_s12 = sphi %s1117_s12, %s1393_s12   ;;  %s1050_s11 = sphi %s1115_s11, %s1392_s11   ;;  %s1046_s10 = sphi %s1113_s10, %s1391_s10   ;;  %s1042_s9 = sphi %s1111_s9, %s1390_s9  }
   0xd   : > { %p53_p0 = scmp.ne.s32.totalorder %s1046_s10, %s1042_s9  ;;  %p54_p1 = scmp.eq.s32.totalorder %s1132_s0, 0 }
   0xe   : > { %p213_p2 = scmp.eq.s32.totalorder %s1132_s0, 1  ;;  %p219_p3 = scmp.eq.s32.totalorder %s782_s13, 1 }
   0xf   : > { %p1141_p4 = por %p54_p1, %p53_p0  ;;  %p783_p5 = scmp.ge.s32.totalorder %s1054_s12, 1 }
  0x10   : > { %p1146_p6 = por %p219_p3, %p53_p0  ;;  %p226_p7 = scmp.lt.s32.totalorder %s1054_s12, 3 }
  0x11   : > { %s1383_s5 = sld [smem:[#allocation14_spill]]  ;;  %s1057_s20 = smov [#allocation7]  }
  0x12   : > { %p1154_p8 = pnand %p783_p5, %p226_p7  ;;  %s242_s21 = sshll.u32 %s1057_s20, 4  ;;  %s243_s21 = int_to_ptr.vmem [resolvable:$true] %s242_s21 }
  0x13   : > { %s1164_s22 = sadd.s32 1, %s1054_s12   ;;  %s1378_s23 = smov 128  }
  0x14   : > { %p834_p9 = pneg %p1154_p8  ;;  %s1379_s24 = smov 8  }
  0x15   : > { %s37_s25 = ssub.s32 %s1054_s12, %s1164_s22  ;;  %s40_s26 = sadd.s32 1, %s1050_s11 }
  0x16   : > { %p835_p10 = pnand %p834_p9, %p54_p1  ;;  %p38_p12 = scmp.eq.s32.totalorder %s37_s25, 0 }
  0x17   : > { %s240_s18 = sshll.u32 %s1383_s5, 4  ;;  %p47_p13 = scmp.ne.s32.totalorder %s1050_s11, %s1046_s10  ;;  %s241_s18 = int_to_ptr.hbm [resolvable:$true] %s240_s18 }
  0x18   : > { %837 = dma.hbm_to_vmem [thread:$0]  (!%p835_p10), %s241_s18, 4096, %s243_s21, [#allocation8], %s1378_s23, %s1378_s23, %s1379_s24  }
  0x19   : > { %p48_p0 = scmp.eq.s32.totalorder %s1054_s12, 0  ;;  %p1180_p3 = por %p213_p2, %p47_p13 }
  0x1a   : > { %s1176_s27 = scalar_select %p38_p12, %s1050_s11, %s40_s26  }
  0x1b   : > { %p847_p5 = scmp.lt.s32.totalorder %s1054_s12, 2  ;;  %s262_s29 = sand.u32 1, %s1050_s11  }
  0x1c   : > { %s825_s30 = sshll.u32 %s1054_s12, 8  ;;  %p49_p7 = por %p48_p0, %p47_p13 }
  0x1d   : > { %s786_s13 = sshll.u32 %s262_s29, 8  ;;  %s272_s18 = scalar_lea.hbm %s1370_s1, %s825_s30 }
  0x1e   : > { %s273_s20 = sshll.u32 %s272_s18, 4  ;;  %s266_s21 = scalar_lea.vmem [#allocation4], %s786_s13  ;;  %s274_s20 = int_to_ptr.hbm [resolvable:$true] %s273_s20 }
  0x1f   : > { %s275_s25 = sshll.u32 %s266_s21, 4  ;;  %p1190_p9 = pnand %p847_p5, %p49_p7  ;;  %s276_s25 = int_to_ptr.vmem [resolvable:$true] %s275_s25 }
  0x20   : > { %s263_s23 = scalar_lea.sflag [#allocation5], %s262_s29  ;;  %s952_s24 = sshra.s32 %s274_s20, 4  ;;  %s953_s24 = int_to_ptr.hbm [resolvable:$true] %s952_s24 }
  0x21   : > { %s954_s5 = scalar_lea.hbm %s953_s24, 256  ;;  %p956_p10 = pneg %p1190_p9 }
  0x22   : > { %p955_p2 = scmp.ne.s32.totalorder %s953_s24, %s954_s5  ;;  %s959_s13 = scalar_lea.hbm %s1370_s1, 512 }
  0x23   : > { %p960_p0 = scmp.lt.s32.totalorder %s953_s24, %s1370_s1  ;;  %p961_p5 = scmp.lt.s32.totalorder %s959_s13, %s954_s5 }
  0x24   : > { %p957_p12 = pnand %p956_p10, %p955_p2 }
  0x25   : > { %p962_p7 = por %p961_p5, %p960_p0 }
  0x26   : > { %p958_p13 = pneg %p957_p12 }
  0x28   : > { %p963_p11 = pnand %p962_p7, %p958_p13 }
  0x2a   : > { %966 = shalt.err (!%p963_p11)
}
  0x2b   : > { %s1387_s29 = smov 8   ;;  %s1388_s21 = smov 128  }
  0x2c   : > { %841 = dma.hbm_to_vmem [thread:$0]  (!%p1190_p9), %s274_s20, 4096, %s276_s25, %s263_s23, %s1388_s21, %s1388_s21, %s1387_s29  }
  0x2d   : > { %303 = sbr.rel (%p1154_p8) target bundleno = 429 (0x1ad), region = 48  ;;  %s1210_s30 = sand.u32 (!%p1154_p8), 1, %s1046_s10  }
  0x2e   : > { %s791_s24 = sshll.u32 (!%p1154_p8), %s1210_s30, 8  ;;  %s306_s5 = scalar_lea.sflag (!%p1154_p8), [#allocation5], %s1210_s30 }
  0x2f   : > { %s1214_s16 = scalar_lea.vmem (!%p1154_p8), [#allocation4], %s791_s24 }
  0x32   : > { %1029 = dma.done.wait (%p1141_p4), %s306_s5, 4096  }
  0x33   : > { %1031 = vsyncadd (%p1141_p4), %s306_s5, 4294963200 }
  0x34   : > { %1033 = dma.done.wait (%p54_p1), [#allocation8], 4096  }
  0x35   : > { %1035 = vsyncadd (%p54_p1), [#allocation8], 4294963200  ;;  %s1225_s19 = sshll.u32 %s1132_s0, 1  ;;  %v389_v0 = vld [vmem:[%s1214_s16 + $0x78] sm:$0xff]  ;;  %v388_v2 = vld [vmem:[%s1214_s16 + $0x70] sm:$0xff]  ;;  %vm403_vm0 = vcmask 523264  }
  0x36   : > { %p356_p8 = scmp.lt.s32.totalorder %s1225_s19, 3  ;;  %s1229_s14 = sld [smem:[#allocation3 + %s1225_s19]]  ;;  %v815_v1 = vld [vmem:[%s1214_s16 + $0xf8] sm:$0xff]  ;;  %416 = vmatpush.xpose.msra.mxu0 %v389_v0  ;;  %v814_v3 = vld [vmem:[%s1214_s16 + $0xf0] sm:$0xff]  ;;  %v1060_v8 = vmov 0   ;;  %v387_v13 = vld [vmem:[%s1214_s16 + $0x68] sm:$0xff] }
  0x37   : > { %s508_s23 = sadd.s32 1, %s1225_s19  ;;  %559 = vmatpush.xpose.msra.mxu2 %v815_v1  ;;  %891 = vset.pattern.permute.xlu2 %v1060_v8  ;;  %v813_v14 = vld [vmem:[%s1214_s16 + $0xe8] sm:$0xff]  ;;  %v386_v20 = vld [vmem:[%s1214_s16 + $0x60] sm:$0xff]  ;;  %v385_v26 = vld [vmem:[%s1214_s16 + $0x58] sm:$0xff]  ;;  %vm480_vm1 = vcmask 261120  }
  0x38   : > { %s1233_s20 = scalar_select %p356_p8, %s1225_s19, 3  ;;  %890 = vset.pattern.permute.xlu0 %v1060_v8  ;;  %889 = vset.pattern.permute.xlu1 %v1060_v8  ;;  %v812_v22 = vld [vmem:[%s1214_s16 + $0xe0] sm:$0xff]  ;;  %v811_v27 = vld [vmem:[%s1214_s16 + $0xd8] sm:$0xff]  ;;  %v384_v29 = vld [vmem:[%s1214_s16 + $0x50] sm:$0xff] }
  0x39   : > { %s1235_s25 = sld [smem:[#allocation3 + %s508_s23]]  ;;  %v810_v31 = vld [vmem:[%s1214_s16 + $0xd0] sm:$0xff]  ;;  %v383_v33 = vld [vmem:[%s1214_s16 + $0x48] sm:$0xff]  ;;  %v382_v35 = vld [vmem:[%s1214_s16 + $0x40] sm:$0xff] }
  0x3a   : > { %s358_s0 = scalar_lea.vmem %s1371_s2, %s1233_s20  ;;  %417 = vmatpush.xpose.msra.mxu0 %v388_v2  ;;  %v809_v34 = vld [vmem:[%s1214_s16 + $0xc8] sm:$0xff]  ;;  %v808_v36 = vld [vmem:[%s1214_s16 + $0xc0] sm:$0xff]  ;;  %v381_v37 = vld [vmem:[%s1214_s16 + $0x38] sm:$0xff] }
  0x3b   : > { %v1248_v4 = vld [vmem:[%s358_s0] ss:$0 sm:$0xff]  ;;  %v893_v6 = vld [vmem:[%s358_s0 + $0x1] ss:$0 sm:$0xff]  ;;  %560 = vmatpush.xpose.msra.mxu2 %v814_v3  ;;  %v807_v38 = vld [vmem:[%s1214_s16 + $0xb8] sm:$0xff] }
  0x3c   : > { %s1245_s17 = sshll.u32 %s1229_s14, 5  ;;  %v380_v39 = vld [vmem:[%s1214_s16 + $0x30] sm:$0xff]  ;;  %v379_v43 = vld [vmem:[%s1214_s16 + $0x28] sm:$0xff]  ;;  %v378_v46 = vld [vmem:[%s1214_s16 + $0x20] sm:$0xff] }
  0x3d   : > { %s1251_s18 = scalar_lea.vmem [#allocation7], %s1245_s17  ;;  %v806_v41 = vld [vmem:[%s1214_s16 + $0xb0] sm:$0xff]  ;;  %v805_v44 = vld [vmem:[%s1214_s16 + $0xa8] sm:$0xff]  ;;  %s1293_s0 = scalar_lea.vmem %s1375_s6, %s1245_s17  ;;  %v804_v47 = vld [vmem:[%s1214_s16 + $0xa0] sm:$0xff] }
  0x3e   : > { %v394_v5 = vld [vmem:[%s1251_s18 + $0x18] sm:$0xff]  ;;  %v393_v9 = vld [vmem:[%s1251_s18 + $0x10] sm:$0xff]  ;;  %418 = vmatpush.xpose.msra.mxu0 %v387_v13  ;;  %v392_v52 = vld [vmem:[%s1251_s18 + $0x8] sm:$0xff]  ;;  %s369_s5 = scalar_lea.vmem %s1373_s4, %s1245_s17 }
  0x3f   : > { %v402_v7 = vmul.f32 %v1248_v4, %v394_v5  ;;  %s1256_s29 = sshll.u32 %s1235_s25, 5  ;;  %v401_v15 = vmul.f32 %v1248_v4, %v393_v9  ;;  %561 = vmatpush.xpose.msra.mxu2 %v813_v14  ;;  %v449_v49 = vld [vmem:[%s1293_s0 + $0x18] sm:$0xff]  ;;  %v376_v53 = vld [vmem:[%s1214_s16 + $0x10] sm:$0xff]  ;;  %v400_v54 = vmul.f32 %v1248_v4, %v392_v52  ;;  %v391_v58 = vld [vmem:[%s1251_s18] sm:$0xff] }
  0x40   : > { %s533_s21 = scalar_lea.vmem [#allocation7], %s1256_s29  ;;  %s588_s23 = scalar_lea.vmem %s1375_s6, %s1256_s29  ;;  %v377_v50 = vld [vmem:[%s1214_s16 + $0x18] sm:$0xff]  ;;  %v802_v55 = vld [vmem:[%s1214_s16 + $0x90] sm:$0xff]  ;;  %v375_v59 = vld [vmem:[%s1214_s16 + $0x8] sm:$0xff]  ;;  %v399_v60 = vmul.f32 %v1248_v4, %v391_v58 }
  0x41   : > { %v413_v10 = vsel %vm403_vm0, %v402_v7, 0.0  ;;  %v537_v11 = vld [vmem:[%s533_s21 + $0x18] sm:$0xff]  ;;  %v536_v16 = vld [vmem:[%s533_s21 + $0x10] sm:$0xff]  ;;  %v535_v18 = vld [vmem:[%s533_s21 + $0x8] sm:$0xff]  ;;  %v410_v23 = vsel %vm403_vm0, %v401_v15, 0.0  ;;  %v407_v57 = vsel %vm403_vm0, %v400_v54, 0.0  ;;  %s511_s18 = scalar_lea.vmem %s1373_s4, %s1256_s29  ;;  %s478_s29 = scalar_lea.vmem %s1376_s7, %s1229_s14 }
  0x42   : > { %414 = vadd.xlane.f32.xlu2 %v413_v10  ;;  %v546_v12 = vmul.f32 %v893_v6, %v537_v11  ;;  %v544_v19 = vmul.f32 %v893_v6, %v535_v18  ;;  %v545_v21 = vmul.f32 %v893_v6, %v536_v16  ;;  %419 = vmatpush.xpose.msra.mxu0 %v386_v20  ;;  %v534_v28 = vld [vmem:[%s533_s21] sm:$0xff]  ;;  %v592_v40 = vld [vmem:[%s588_s23 + $0x18] sm:$0xff]  ;;  %v591_v42 = vld [vmem:[%s588_s23 + $0x10] sm:$0xff]  ;;  %v404_v62 = vsel %vm403_vm0, %v399_v60, 0.0 }
  0x43   : > { %562 = vmatpush.xpose.msra.mxu2 %v812_v22  ;;  %v543_v30 = vmul.f32 %v893_v6, %v534_v28  ;;  %v590_v45 = vld [vmem:[%s588_s23 + $0x8] sm:$0xff]  ;;  %v589_v48 = vld [vmem:[%s588_s23] sm:$0xff]  ;;  %v803_v51 = vld [vmem:[%s1214_s16 + $0x98] sm:$0xff]  ;;  %s793_s23 = sshll.u32 %s1210_s30, 1 }
  0x44   : > { %v556_v17 = vsel %vm403_vm0, %v546_v12, 0.0  ;;  %v550_v24 = vsel %vm403_vm0, %v544_v19, 0.0  ;;  %v553_v25 = vsel %vm403_vm0, %v545_v21, 0.0  ;;  %v448_v56 = vld [vmem:[%s1293_s0 + $0x10] sm:$0xff]  ;;  %v801_v61 = vld [vmem:[%s1214_s16 + $0x88] sm:$0xff]  ;;  %v374_v63 = vld [vmem:[%s1214_s16] sm:$0xff] }
  0x45   : > { %557 = vadd.xlane.f32.xlu0 %v556_v17  ;;  %551 = vadd.xlane.f32.xlu1 %v550_v24  ;;  %v547_v32 = vsel %vm403_vm0, %v543_v30, 0.0  ;;  %v800_v0 = vld [vmem:[%s1214_s16 + $0x80] sm:$0xff]  ;;  %v447_v1 = vld [vmem:[%s1293_s0 + $0x8] sm:$0xff]  ;;  %v372_v7 = vld [vmem:[%s369_s5 + $0x10] sm:$0xff]  ;;  %s353_s26 = scalar_lea.vmem [#allocation9], %s793_s23  ;;  %s663_s16 = scalar_lea.hbm %s1377_s8, %s1225_s19 }
  0x46   : > { %420 = vmatpush.xpose.msra.mxu0 %v385_v26  ;;  %v370_v2 = vld [vmem:[%s369_s5] sm:$0xff]  ;;  %v371_v5 = vld [vmem:[%s369_s5 + $0x8] sm:$0xff]  ;;  %v514_v8 = vld [vmem:[%s511_s18 + $0x10] sm:$0xff]  ;;  %s664_s17 = sshll.u32 %s353_s26, 4  ;;  %s1002_s19 = scalar_lea.hbm %s1377_s8, 4  ;;  %s665_s17 = int_to_ptr.vmem [resolvable:$true] %s664_s17 }
  0x47   : > { %563 = vmatpush.xpose.msra.mxu2 %v811_v27  ;;  %v512_v3 = vld [vmem:[%s511_s18] sm:$0xff]  ;;  %v513_v6 = vld [vmem:[%s511_s18 + $0x8] sm:$0xff]  ;;  %v373_v9 = vld [vmem:[%s369_s5 + $0x18] sm:$0xff]  ;;  %s363_s5 = scalar_lea.vmem %s1372_s3, %s1233_s20  ;;  %s653_s20 = scalar_lea.sflag [#allocation6], %s1210_s30 }
  0x48   : > { %v446_v4 = vld [vmem:[%s1293_s0] sm:$0xff]  ;;  %v515_v10 = vld [vmem:[%s511_s18 + $0x18] sm:$0xff]  ;;  %s621_s0 = scalar_lea.vmem %s1376_s7, %s1235_s25 }
  0x49   : > { %v479_v54 = vld [vmem:[%s478_s29] sm:$0x1]  ;;  %s666_s29 = sshll.u32 %s663_s16, 4  ;;  %s667_s29 = int_to_ptr.hbm [resolvable:$true] %s666_s29 }
  0x4a   : > { %411 = vadd.xlane.f32.xlu2 %v410_v23  ;;  %421 = vmatpush.xpose.msra.mxu0 %v384_v29  ;;  %s996_s13 = sshra.s32 %s667_s29, 4  ;;  %s997_s13 = int_to_ptr.hbm [resolvable:$true] %s996_s13 }
  0x4b   : > { %564 = vmatpush.xpose.msra.mxu2 %v810_v31  ;;  %s998_s14 = scalar_lea.hbm %s997_s13, 2  ;;  %p1003_p9 = scmp.lt.s32.totalorder %s997_s13, %s1377_s8 }
  0x4c   : > { %p999_p1 = scmp.ne.s32.totalorder %s997_s13, %s998_s14  ;;  %p1004_p2 = scmp.lt.s32.totalorder %s1002_s19, %s998_s14 }
  0x4d   : > { %554 = vadd.xlane.f32.xlu0 %v553_v25 }
  0x4e   : > { %422 = vmatpush.xpose.msra.mxu0 %v383_v33  ;;  %p1000_p4 = pnand %p999_p1, %p1180_p3  ;;  %p1005_p10 = por %p1004_p2, %p1003_p9 }
  0x4f   : > { %565 = vmatpush.xpose.msra.mxu2 %v809_v34 }
  0x50   : > { %p1001_p11 = pneg %p1000_p4 }
  0x52   : > { %423 = vmatpush.xpose.msra.mxu0 %v382_v35  ;;  %p1006_p12 = pnand %p1005_p10, %p1001_p11 }
  0x53   : > { %566 = vmatpush.xpose.msra.mxu2 %v808_v36 }
  0x55   : > { %548 = vadd.xlane.f32.xlu0 %v547_v32 }
  0x56   : > { %424 = vmatpush.xpose.msra.mxu0 %v381_v37 }
  0x57   : > { %567 = vmatpush.xpose.msra.mxu2 %v807_v38 }
  0x5a   : > { %425 = vmatpush.xpose.msra.mxu0 %v380_v39 }
  0x5b   : > { %568 = vmatpush.xpose.msra.mxu2 %v806_v41 }
  0x5e   : > { %610 = vperm.xlu1 %889, %v592_v40   ;;  %426 = vmatpush.xpose.msra.mxu0 %v379_v43 }
  0x5f   : > { %569 = vmatpush.xpose.msra.mxu2 %v805_v44 }
  0x62   : > { %605 = vperm.xlu2 %891, %v591_v42   ;;  %427 = vmatpush.xpose.msra.mxu0 %v378_v46 }
  0x63   : > { %570 = vmatpush.xpose.msra.mxu2 %v804_v47 }
  0x66   : > { %467 = vperm.xlu1 %889, %v449_v49   ;;  %428 = vmatpush.xpose.msra.mxu0 %v377_v50 }
  0x67   : > { %571 = vmatpush.xpose.msra.mxu2 %v803_v51 }
  0x69   : > { %600 = vperm.xlu0 %890, %v590_v45  }
  0x6a   : > { %595 = vperm.xlu2 %891, %v589_v48   ;;  %429 = vmatpush.xpose.msra.mxu0 %v376_v53 }
  0x6b   : > { %572 = vmatpush.xpose.msra.mxu2 %v802_v55 }
  0x6e   : > { %462 = vperm.xlu1 %889, %v448_v56   ;;  %430 = vmatpush.xpose.msra.mxu0 %v375_v59  ;;  %v622_v59 = vld [vmem:[%s621_s0] sm:$0x1] }
  0x6f   : > { %573 = vmatpush.xpose.msra.mxu2 %v801_v61  ;;  %v504_v61 = vld [vmem:[%s363_s5] sm:$0x1] }
  0x70   : > { %vm505_vm2 = vcmp.ne.s32.totalorder %v504_v61, 0 }
  0x72   : > { %431 = vmatpush.xpose.msra.mxu0 %v374_v63 }
  0x73   : > { %574 = vmatpush.xpose.msra.mxu2 %v800_v0  ;;  %v818_v0 = vld [vmem:[%s363_s5 + $0x1] sm:$0x1] }
  0x74   : > { %vm648_vm3 = vcmp.ne.s32.totalorder %v818_v0, 0 }
  0x75   : > { %432 = vmatmul.f32.vlgmr.msra.gmra.mxu0 %v370_v2 }
  0x76   : > { %457 = vperm.xlu1 %889, %v447_v1   ;;  %575 = vmatmul.f32.vlgmr.msra.gmra.mxu2 %v512_v3 }
  0x7d   : > { %435 = vmatmul.f32.gmra.mxu0 %v371_v5 }
  0x7e   : > { %452 = vperm.xlu1 %889, %v446_v4   ;;  %578 = vmatmul.f32.gmra.mxu2 %v513_v6 }
  0x85   : > { %438 = vmatmul.f32.gmra.mxu0 %v372_v7 }
  0x86   : > { %581 = vmatmul.f32.gmra.mxu2 %v514_v8 }
  0x8d   : > { %441 = vmatmul.f32.gmra.mxu0 %v373_v9 }
  0x8e   : > { %584 = vmatmul.f32.gmra.mxu2 %v515_v10 }
  0x93   : > { %408 = vadd.xlane.f32.xlu0 %v407_v57  ;;  %405 = vadd.xlane.f32.xlu2 %v404_v62 }
  0xb5   : > { %v415_v12 = vpop.xlane.xlu2 %414 }
  0xb8   : > { %v552_v11 = vpop.xlane.xlu1 %551  ;;  %v558_v13 = vpop.xlane.xlu0 %557 }
  0xbd   : > { %v412_v15 = vpop.xlane.xlu2 %411 }
  0xc0   : > { %v555_v16 = vpop.xlane.xlu0 %554 }
  0xc5   : > { %v606_v19 = vpop.permute.xlu2 %605 }
  0xc8   : > { %v549_v20 = vpop.xlane.xlu0 %548 }
  0xcd   : > { %v596_v26 = vpop.permute.xlu2 %595 }
  0xd0   : > { %v611_v14 = vpop.permute.xlu1 %610 }
  0xd8   : > { %v468_v17 = vpop.permute.xlu1 %467 }
  0xdb   : > { %v601_v24 = vpop.permute.xlu0 %600 }
  0xe0   : > { %v463_v23 = vpop.permute.xlu1 %462 }
  0xe8   : > { %v458_v28 = vpop.permute.xlu1 %457 }
  0xf0   : > { %v453_v40 = vpop.permute.xlu1 %452 }
  0xf2   : > { %v433_v18 = vpop.f32.mrf.mxu0 }
  0xf9   : > { %v576_v21 = vpop.f32.mrf.mxu2 }
  0xfa   : > { %v436_v22 = vpop.f32.mrf.mxu0  ;;  %v577_v46 = vadd.f32 %v576_v21, %v549_v20 }
  0xfc   : > { %v613_v52 = vadd.f32 %v596_v26, %v577_v46 }
 0x101   : > { %v579_v25 = vpop.f32.mrf.mxu2 }
 0x102   : > { %v439_v27 = vpop.f32.mrf.mxu0  ;;  %v580_v44 = vadd.f32 %v579_v25, %v552_v11 }
 0x103   : > { %v440_v30 = vadd.f32 %v439_v27, %v412_v15 }
 0x104   : > { %v614_v50 = vadd.f32 %v601_v24, %v580_v44 }
 0x105   : > { %v472_v37 = vadd.f32 %v463_v23, %v440_v30 }
 0x106   : > { %v409_v29 = vpop.xlane.xlu0 %408  ;;  %v406_v32 = vpop.xlane.xlu2 %405 }
 0x107   : > { %v437_v34 = vadd.f32 %v436_v22, %v409_v29  ;;  %v434_v36 = vadd.f32 %v433_v18, %v406_v32 }
 0x109   : > { %v582_v31 = vpop.f32.mrf.mxu2  ;;  %v471_v39 = vadd.f32 %v458_v28, %v437_v34  ;;  %v470_v42 = vadd.f32 %v453_v40, %v434_v36 }
 0x10a   : > { %v442_v33 = vpop.f32.mrf.mxu0  ;;  %v583_v41 = vadd.f32 %v582_v31, %v555_v16 }
 0x10b   : > { %v443_v35 = vadd.f32 %v442_v33, %v415_v12 }
 0x10c   : > { %v615_v47 = vadd.f32 %v606_v19, %v583_v41 }
 0x10d   : > { %v473_v38 = vadd.f32 %v468_v17, %v443_v35 }
 0x10f   : > { %894 = vtanh.f32 %v473_v38 }
 0x110   : > { %896 = vtanh.f32 %v472_v37 }
 0x111   : > { %v585_v43 = vpop.f32.mrf.mxu2  ;;  %898 = vtanh.f32 %v471_v39 }
 0x112   : > { %v586_v45 = vadd.f32 %v585_v43, %v558_v13  ;;  %900 = vtanh.f32 %v470_v42 }
 0x114   : > { %v616_v48 = vadd.f32 %v611_v14, %v586_v45 }
 0x115   : > { %v895_v49 = vpop.eup %894 }
 0x116   : > { %496 = vmatpush.msra.mxu1 %v895_v49  ;;  %902 = vtanh.f32 %v616_v48  ;;  %v897_v51 = vpop.eup %896 }
 0x117   : > { %904 = vtanh.f32 %v615_v47  ;;  %v899_v53 = vpop.eup %898 }
 0x118   : > { %497 = vmatpush.msra.mxu1 %v897_v51  ;;  %906 = vtanh.f32 %v614_v50  ;;  %v901_v55 = vpop.eup %900 }
 0x119   : > { %908 = vtanh.f32 %v613_v52 }
 0x11a   : > { %498 = vmatpush.msra.mxu1 %v899_v53 }
 0x11c   : > { %v903_v56 = vpop.eup %902  ;;  %499 = vmatpush.msra.mxu1 %v901_v55 }
 0x11d   : > { %638 = vmatpush.msra.mxu3 %v903_v56  ;;  %798 = vmatmul.msk.f32.vlgmr.msra.gmra.mxu1 %vm480_vm1, %v479_v54  ;;  %v905_v57 = vpop.eup %904 }
 0x11e   : > { %v907_v58 = vpop.eup %906 }
 0x11f   : > { %639 = vmatpush.msra.mxu3 %v905_v57  ;;  %v909_v60 = vpop.eup %908 }
 0x121   : > { %640 = vmatpush.msra.mxu3 %v907_v58 }
 0x123   : > { %641 = vmatpush.msra.mxu3 %v909_v60 }
 0x124   : > { %817 = vmatmul.msk.f32.vlgmr.msra.gmra.mxu3 %vm480_vm1, %v622_v59 }
 0x19a   : > { %v501_v62 = vpop.f32.mrf.mxu1 }
 0x19b   : > { %v506_v63 = vsel %vm505_vm2, -inf, %v501_v62 }
 0x19c   : > { %507 = vst [vmem:[%s353_s26] sm:$0x1] %v506_v63 }
 0x1a7   : > { %v643_v1 = vpop.f32.mrf.mxu3 }
 0x1a8   : > { %v649_v2 = vsel %vm648_vm3, -inf, %v643_v1 }
 0x1a9   : > { %819 = vst [vmem:[%s353_s26 + $0x1] sm:$0x1] %v649_v2 }
 0x1aa   : > { %1009 = shalt.err (!%p1006_p12)
}
 0x1ab   : > { %s1061_s30 = smov 16   ;;  %s1062_s23 = smov 1  }
 0x1ac   : > { %832 = dma.vmem_to_hbm [thread:$0]  (%p1180_p3), %s665_s17, 32, %s667_s29, %s653_s20, %s1061_s30, %s1061_s30, %s1062_s23  }
 0x1ad PF: > { %s681_s26 = sand.u32 1, %s1042_s9   ;;  %p1389_p13 = scmp.ge.s32.totalorder %s1054_s12, 2 }
 0x1ae   : > { %s682_s25 = scalar_lea.sflag [#allocation6], %s681_s26 }
 0x1af   : > { %p843_p0 = pnand %p1389_p13, %p1146_p6 }
 0x1b1   : > { %p844_p5 = pneg %p843_p0 }
 0x1b3   : > { %1037 = dma.done.wait (%p844_p5), %s682_s25, 32  }
 0x1b4   : > { %1039 = vsyncadd (%p844_p5), %s682_s25, 4294967264  ;;  %p30_p7 = scmp.ge.s32.totalorder %s1164_s22, 4   ;;  %s1390_s9 = smov %s1046_s10 }
 0x1b5   : > { %s1391_s10 = smov %s1050_s11  ;;  %s1392_s11 = smov %s1176_s27 }
 0x1b6   : > { %s1393_s12 = smov %s1164_s22  ;;  %32 = sbr.rel (!%p30_p7) target bundleno = 12 (0xc), region = 115 }
 0x1bb   :  { %688 = vsyncpa [#allocation5], 1 }
 0x1bc   :  { %690 = vsyncpa [#allocation5 + $0x1], 1 }
 0x1bd   :  { %691 = vsyncpa [#allocation8], 1 }
 0x1be   :  { %692 = vsyncpa [#allocation6], 1 }
 0x1bf   :  { %694 = vsyncpa [#allocation6 + $0x1], 1 }

</bundles_post_ra>
